<compile_context>
chip_gen: v7x
topology: tpu7x:2x2x1
jax: 0.10.0
libtpu: 0.0.40
codegen_flags: <defaults>
</compile_context>

<pallas_src>
import math

import jax
import jax.numpy as jnp
from jax.experimental import pallas as pl
from jax.experimental.pallas import tpu as pltpu


def _latent_corr_kernel(xq_ref, xk_ref, m_ref, out_ref):
    # Grid: (row-tiles [parallel], batch-tiles [arbitrary/reduction, trailing]).
    bt = pl.program_id(1)

    @pl.when(bt == 0)
    def _():
        out_ref[...] = jnp.zeros_like(out_ref)

    m = m_ref[...]                        # (F, F) = W_query @ W_key.T / sqrt(3)
    tb = xq_ref.shape[0]                  # batch elements in this block (static)

    # Fully unrolled static loop over the TB batch elements of this block.
    for i in range(tb):
        xq = xq_ref[i]                    # (TQ, F) query rows of batch element i
        xk = xk_ref[i]                    # (N,  F) all rows (keys) of batch element i

        qm = jnp.dot(xq, m, preferred_element_type=jnp.float32)          # (TQ, F)
        # data = (x[b] @ M) @ x[b].T  without materializing a transpose.
        data = jax.lax.dot_general(
            qm, xk,
            dimension_numbers=(((1,), (1,)), ((), ())),
            preferred_element_type=jnp.float32)                          # (TQ, N)

        # LeakyReLU(alpha=0.2)
        data = jnp.where(data > 0, data, 0.2 * data)

        # softmax over the last dim (dim=2 in torch), max-subtracted
        data = data - jnp.max(data, axis=-1, keepdims=True)
        e = jnp.exp(data)
        s = jnp.sum(e, axis=-1, keepdims=True)
        r = pl.reciprocal(s, approx=True)
        r = r * (2.0 - s * r)             # one Newton step -> f32-accurate 1/s

        # dropout(p=0.4) in eval mode: identity
        out_ref[...] += e * r             # accumulate batch-sum directly in output


def _pick_tile(n, candidates):
    for c in candidates:
        if n % c == 0:
            return c
    return n


def latent_correlation_layer(x, weight_key, weight_query):
    """x: (B, N, F) float32. Returns (attention (N, N), input (B, N, F))."""
    B, N, F = x.shape

    # Row tile (multiple of 8 or full N) and batch tile (divides B).
    TQ = _pick_tile(N, (256, 128, 8))
    TB = _pick_tile(B, (8, 4, 2))

    # Fused projection matrix: query @ key.T == x @ (W_q @ W_k.T) @ x.T ; d_k = 3.
    m = jnp.dot(weight_query, weight_key.T,
                precision=jax.lax.Precision.HIGHEST) / jnp.sqrt(jnp.float32(3.0))

    attn_sum = pl.pallas_call(
        _latent_corr_kernel,
        out_shape=jax.ShapeDtypeStruct((N, N), jnp.float32),
        grid_spec=pltpu.PrefetchScalarGridSpec(
            num_scalar_prefetch=0,
            grid=(N // TQ, B // TB),
            in_specs=[
                pl.BlockSpec((TB, TQ, F), lambda q, b: (b, q, 0)),  # query-row slice
                pl.BlockSpec((TB, N, F), lambda q, b: (b, 0, 0)),   # full rows (keys)
                pl.BlockSpec((F, F), lambda q, b: (0, 0)),          # fused M (full)
            ],
            out_specs=pl.BlockSpec((TQ, N), lambda q, b: (q, 0)),   # resident over batch
        ),
        compiler_params=pltpu.CompilerParams(
            dimension_semantics=("parallel", "arbitrary"),
        ),
    )(x, x, m)

    attn_mean = attn_sum / jnp.float32(B)
    attention = 0.5 * (attn_mean + attn_mean.T)
    # forward() returns the input unchanged (permute twice == identity)
    return attention, x


def _xavier_uniform(key, shape, gain):
    fan_in, fan_out = shape
    bound = gain * math.sqrt(6.0 / (fan_in + fan_out))
    return jax.random.uniform(key, shape, jnp.float32, minval=-bound, maxval=bound)


def _reference(x, wk, wq):
    key = jnp.einsum("bnf,fk->bnk", x, wk)
    query = jnp.einsum("bnf,fk->bnk", x, wq)
    data = jnp.einsum("bnk,bmk->bnm", query, key) / jnp.sqrt(3.0)
    data = jnp.where(data > 0, data, 0.2 * data)
    attn = jax.nn.softmax(data, axis=2)
    attn = jnp.mean(attn, axis=0)
    return 0.5 * (attn + attn.T), x


if __name__ == "__main__":
    B, N, F = 2, 16, 4  # batch, nodes/time-steps, num_features
    root = jax.random.PRNGKey(0)
    k_x, k_wk, k_wq = jax.random.split(root, 3)

    x = jax.random.normal(k_x, (B, N, F), dtype=jnp.float32)
    gain = 1.414
    weight_key = _xavier_uniform(k_wk, (F, 3), gain)
    weight_query = _xavier_uniform(k_wq, (F, 3), gain)

    attention, inp = latent_correlation_layer(x, weight_key, weight_query)
    jax.block_until_ready((attention, inp))

    ref_attn, ref_inp = _reference(x, weight_key, weight_query)
    assert attention.shape == (N, N)
    assert inp.shape == (B, N, F)
    assert jnp.allclose(attention, ref_attn, atol=1e-5, rtol=1e-5)
    assert jnp.allclose(inp, ref_inp)

    print("KERNEL_OK")
</pallas_src>

<mosaic_0001>
module attributes {stable_mosaic.version = 11 : i64} {
  func.func @_latent_corr_kernel(%arg0: i32, %arg1: i32, %arg2: memref<2x8x4xf32, #tpu.memory_space<vmem>>, %arg3: memref<2x16x4xf32, #tpu.memory_space<vmem>>, %arg4: memref<4x4xf32, #tpu.memory_space<vmem>>, %arg5: memref<8x16xf32, #tpu.memory_space<vmem>>) attributes {dimension_semantics = [#tpu.dimension_semantics<parallel>, #tpu.dimension_semantics<arbitrary>], iteration_bounds = array<i64: 2, 1>, scalar_prefetch = 0 : i64, scratch_operands = 0 : i64, tpu.core_type = #tpu.core_type<tc>, window_params = [{transform_indices = @transform_0, window_bounds = array<i64: 2, 8, 4>}, {transform_indices = @transform_1, window_bounds = array<i64: 2, 16, 4>}, {pipeline_mode = #tpu.pipeline_mode<synchronous>, transform_indices = @transform_2, window_bounds = array<i64: 4, 4>}, {transform_indices = @transform_3, window_bounds = array<i64: 8, 16>}]} {
    %c0_i32 = arith.constant 0 : i32
    %0 = arith.cmpi eq, %arg1, %c0_i32 : i32
    %1 = arith.extui %0 : i1 to i32
    %c0_i32_0 = arith.constant 0 : i32
    %2 = arith.cmpi ne, %1, %c0_i32_0 : i32
    scf.if %2 {
      %cst_34 = arith.constant 0.000000e+00 : f32
      %60 = vector.broadcast %cst_34 : f32 to vector<8x16xf32>
      %c0_35 = arith.constant 0 : index
      %c0_36 = arith.constant 0 : index
      %61 = vector.load %arg5[%c0_35, %c0_36] : memref<8x16xf32, #tpu.memory_space<vmem>>, vector<8x16xf32>
      tpu.vector_store %arg5[%c0_35, %c0_36], %60 {strides = array<i32>} : memref<8x16xf32, #tpu.memory_space<vmem>>, vector<8x16xf32>,
    } else {
    }
    %c0 = arith.constant 0 : index
    %c0_1 = arith.constant 0 : index
    %3 = vector.load %arg4[%c0, %c0_1] : memref<4x4xf32, #tpu.memory_space<vmem>>, vector<4x4xf32>
    %c0_2 = arith.constant 0 : index
    %c0_3 = arith.constant 0 : index
    %c0_4 = arith.constant 0 : index
    %4 = vector.load %arg2[%c0_2, %c0_3, %c0_4] : memref<2x8x4xf32, #tpu.memory_space<vmem>>, vector<1x8x4xf32>
    %5 = vector.shape_cast %4 : vector<1x8x4xf32> to vector<8x4xf32>
    %c0_5 = arith.constant 0 : index
    %c0_6 = arith.constant 0 : index
    %c0_7 = arith.constant 0 : index
    %6 = vector.load %arg3[%c0_5, %c0_6, %c0_7] : memref<2x16x4xf32, #tpu.memory_space<vmem>>, vector<1x16x4xf32>
    %7 = vector.shape_cast %6 : vector<1x16x4xf32> to vector<16x4xf32>
    %cst = arith.constant dense<0.000000e+00> : vector<8x4xf32>
    %8 = tpu.matmul %5, %3, %cst {dimension_numbers = #tpu.dot_dimension_numbers<[1], [0], [0], [1], [0, 0, 1, 1], [], []>} : vector<8x4xf32>, vector<4x4xf32>, vector<8x4xf32> -> vector<8x4xf32>
    %cst_8 = arith.constant dense<0.000000e+00> : vector<8x16xf32>
    %9 = tpu.matmul %8, %7, %cst_8 {dimension_numbers = #tpu.dot_dimension_numbers<[1], [1], [0], [0], [0, 0, 1, 0], [], []>} : vector<8x4xf32>, vector<16x4xf32>, vector<8x16xf32> -> vector<8x16xf32>
    %cst_9 = arith.constant 0.000000e+00 : f32
    %10 = vector.broadcast %cst_9 : f32 to vector<8x16xf32>
    %11 = arith.cmpf ogt, %9, %10 : vector<8x16xf32>
    %cst_10 = arith.constant 2.000000e-01 : f32
    %12 = vector.broadcast %cst_10 : f32 to vector<8x16xf32>
    %13 = arith.mulf %12, %9 : vector<8x16xf32>
    %14 = arith.select %11, %9, %13 : vector<8x16xi1>, vector<8x16xf32>
    %cst_11 = arith.constant dense<0xFF800000> : vector<8xf32>
    %15 = vector.multi_reduction <maximumf>, %14, %cst_11 [1] : vector<8x16xf32> to vector<8xf32>
    %16 = vector.shape_cast %15 : vector<8xf32> to vector<8x1xf32>
    %17 = vector.broadcast %16 : vector<8x1xf32> to vector<8x16xf32>
    %18 = arith.subf %14, %17 : vector<8x16xf32>
    %19 = math.exp %18 : vector<8x16xf32>
    %cst_12 = arith.constant dense<0.000000e+00> : vector<8xf32>
    %20 = vector.multi_reduction <add>, %19, %cst_12 [1] : vector<8x16xf32> to vector<8xf32>
    %21 = vector.shape_cast %20 : vector<8xf32> to vector<8x1xf32>
    %22 = tpu.reciprocal %21 {approx = true} : vector<8x1xf32> -> vector<8x1xf32>
    %23 = arith.mulf %21, %22 : vector<8x1xf32>
    %cst_13 = arith.constant 2.000000e+00 : f32
    %24 = vector.broadcast %cst_13 : f32 to vector<8x1xf32>
    %25 = arith.subf %24, %23 : vector<8x1xf32>
    %26 = arith.mulf %22, %25 : vector<8x1xf32>
    %c0_14 = arith.constant 0 : index
    %c0_15 = arith.constant 0 : index
    %27 = vector.load %arg5[%c0_14, %c0_15] : memref<8x16xf32, #tpu.memory_space<vmem>>, vector<8x16xf32>
    %28 = vector.broadcast %26 : vector<8x1xf32> to vector<8x16xf32>
    %29 = arith.mulf %19, %28 : vector<8x16xf32>
    %30 = arith.addf %27, %29 : vector<8x16xf32>
    %c0_16 = arith.constant 0 : index
    %c0_17 = arith.constant 0 : index
    %31 = vector.load %arg5[%c0_16, %c0_17] : memref<8x16xf32, #tpu.memory_space<vmem>>, vector<8x16xf32>
    tpu.vector_store %arg5[%c0_16, %c0_17], %30 {strides = array<i32>} : memref<8x16xf32, #tpu.memory_space<vmem>>, vector<8x16xf32>,
    %c1 = arith.constant 1 : index
    %c0_18 = arith.constant 0 : index
    %c0_19 = arith.constant 0 : index
    %32 = vector.load %arg2[%c1, %c0_18, %c0_19] : memref<2x8x4xf32, #tpu.memory_space<vmem>>, vector<1x8x4xf32>
    %33 = vector.shape_cast %32 : vector<1x8x4xf32> to vector<8x4xf32>
    %c1_20 = arith.constant 1 : index
    %c0_21 = arith.constant 0 : index
    %c0_22 = arith.constant 0 : index
    %34 = vector.load %arg3[%c1_20, %c0_21, %c0_22] : memref<2x16x4xf32, #tpu.memory_space<vmem>>, vector<1x16x4xf32>
    %35 = vector.shape_cast %34 : vector<1x16x4xf32> to vector<16x4xf32>
    %cst_23 = arith.constant dense<0.000000e+00> : vector<8x4xf32>
    %36 = tpu.matmul %33, %3, %cst_23 {dimension_numbers = #tpu.dot_dimension_numbers<[1], [0], [0], [1], [0, 0, 1, 1], [], []>} : vector<8x4xf32>, vector<4x4xf32>, vector<8x4xf32> -> vector<8x4xf32>
    %cst_24 = arith.constant dense<0.000000e+00> : vector<8x16xf32>
    %37 = tpu.matmul %36, %35, %cst_24 {dimension_numbers = #tpu.dot_dimension_numbers<[1], [1], [0], [0], [0, 0, 1, 0], [], []>} : vector<8x4xf32>, vector<16x4xf32>, vector<8x16xf32> -> vector<8x16xf32>
    %cst_25 = arith.constant 0.000000e+00 : f32
    %38 = vector.broadcast %cst_25 : f32 to vector<8x16xf32>
    %39 = arith.cmpf ogt, %37, %38 : vector<8x16xf32>
    %cst_26 = arith.constant 2.000000e-01 : f32
    %40 = vector.broadcast %cst_26 : f32 to vector<8x16xf32>
    %41 = arith.mulf %40, %37 : vector<8x16xf32>
    %42 = arith.select %39, %37, %41 : vector<8x16xi1>, vector<8x16xf32>
    %cst_27 = arith.constant dense<0xFF800000> : vector<8xf32>
    %43 = vector.multi_reduction <maximumf>, %42, %cst_27 [1] : vector<8x16xf32> to vector<8xf32>
    %44 = vector.shape_cast %43 : vector<8xf32> to vector<8x1xf32>
    %45 = vector.broadcast %44 : vector<8x1xf32> to vector<8x16xf32>
    %46 = arith.subf %42, %45 : vector<8x16xf32>
    %47 = math.exp %46 : vector<8x16xf32>
    %cst_28 = arith.constant dense<0.000000e+00> : vector<8xf32>
    %48 = vector.multi_reduction <add>, %47, %cst_28 [1] : vector<8x16xf32> to vector<8xf32>
    %49 = vector.shape_cast %48 : vector<8xf32> to vector<8x1xf32>
    %50 = tpu.reciprocal %49 {approx = true} : vector<8x1xf32> -> vector<8x1xf32>
    %51 = arith.mulf %49, %50 : vector<8x1xf32>
    %cst_29 = arith.constant 2.000000e+00 : f32
    %52 = vector.broadcast %cst_29 : f32 to vector<8x1xf32>
    %53 = arith.subf %52, %51 : vector<8x1xf32>
    %54 = arith.mulf %50, %53 : vector<8x1xf32>
    %c0_30 = arith.constant 0 : index
    %c0_31 = arith.constant 0 : index
    %55 = vector.load %arg5[%c0_30, %c0_31] : memref<8x16xf32, #tpu.memory_space<vmem>>, vector<8x16xf32>
    %56 = vector.broadcast %54 : vector<8x1xf32> to vector<8x16xf32>
    %57 = arith.mulf %47, %56 : vector<8x16xf32>
    %58 = arith.addf %55, %57 : vector<8x16xf32>
    %c0_32 = arith.constant 0 : index
    %c0_33 = arith.constant 0 : index
    %59 = vector.load %arg5[%c0_32, %c0_33] : memref<8x16xf32, #tpu.memory_space<vmem>>, vector<8x16xf32>
    tpu.vector_store %arg5[%c0_32, %c0_33], %58 {strides = array<i32>} : memref<8x16xf32, #tpu.memory_space<vmem>>, vector<8x16xf32>,
    return
  }
  func.func @transform_0(%arg0: i32, %arg1: i32) -> (i32, i32, i32) {
    %c0_i32 = arith.constant 0 : i32
    %c0_i32_0 = arith.constant 0 : i32
    return %arg1, %arg0, %c0_i32 : i32, i32, i32
  }
  func.func @transform_1(%arg0: i32, %arg1: i32) -> (i32, i32, i32) {
    %c0_i32 = arith.constant 0 : i32
    %c0_i32_0 = arith.constant 0 : i32
    %c0_i32_1 = arith.constant 0 : i32
    return %arg1, %c0_i32, %c0_i32_0 : i32, i32, i32
  }
  func.func @transform_2(%arg0: i32, %arg1: i32) -> (i32, i32) {
    %c0_i32 = arith.constant 0 : i32
    %c0_i32_0 = arith.constant 0 : i32
    %c0_i32_1 = arith.constant 0 : i32
    return %c0_i32, %c0_i32_0 : i32, i32
  }
  func.func @transform_3(%arg0: i32, %arg1: i32) -> (i32, i32) {
    %c0_i32 = arith.constant 0 : i32
    %c0_i32_0 = arith.constant 0 : i32
    return %arg0, %c0_i32 : i32, i32
  }
}

</mosaic_0001>

<bundles_post_ra>
// kernel: tpu_custom_call.1
= control target key start
LH: loop header
LB: loop body
LE: loop exit
PB: predicated region body
PF: predicated region fallthrough
CT: control target
= control target key end

     0   :  { %8 = vsyncpa [#allocation4], 0  ;;  %s1120_s0 = inlined_call_operand.vmem [shape: f32[2,16,4], index: 0, kind: input, shape index: {}]   ;;  %s1121_s1 = inlined_call_operand.vmem [shape: f32[2,16,4], index: 1, kind: input, shape index: {}]   ;;  %s1122_s2 = inlined_call_operand.vmem [shape: f32[4,4], index: 2, kind: input, shape index: {}]   ;;  %s1123_s3 = inlined_call_operand.hbm [shape: f32[16,16], index: 3, kind: output, shape index: {}]  }
   0x1   :  { %10 = vsyncpa [#allocation4 + $0x1], 0  ;;  %s958_s12 = smov 0   ;;  %s960_s13 = smov 0  }
   0x2   :  { %s962_s14 = smov 0   ;;  %s964_s15 = smov 0  }
   0x3   :  { %s966_s16 = smov 0   ;;  %s968_s17 = smov 0  }
   0x4 LB: > { %s719_s18 = sadd.s32 4294967295, %s932_s17   ;;  %s720_s19 = sadd.s32 4294967294, %s932_s17   ;;  %s932_s17 = sphi %s968_s17, %s16_s17   ;;  %s928_s16 = sphi %s966_s16, %s1130_s16   ;;  %s924_s15 = sphi %s964_s15, %s1129_s15   ;;  %s920_s14 = sphi %s962_s14, %s1128_s14   ;;  %s916_s13 = sphi %s960_s13, %s1127_s13   ;;  %s912_s12 = sphi %s958_s12, %s1126_s12  }
   0x5   : > { %s28_s20 = sadd.s32 1, %s928_s16  ;;  %s37_s21 = sadd.s32 1, %s920_s14 }
   0x6   : > { %p30_p0 = scmp.ge.s32.totalorder %s28_s20, 2  ;;  %p44_p1 = scmp.ne.s32.totalorder %s920_s14, %s916_s13 }
   0x7   : > { %p45_p2 = scmp.eq.s32.totalorder %s932_s17, 0  ;;  %p121_p3 = scmp.eq.s32.totalorder %s719_s18, 1 }
   0x8   : > { %s1132_s20 = smov (%p30_p0, %s28_s20), 0  ;;  %p126_p6 = scmp.ne.s32.totalorder %s916_s13, %s912_s12 }
   0x9   : > { %p46_p4 = por %p45_p2, %p44_p1  ;;  %p997_p5 = por %p121_p3, %p44_p1 }
   0xa   : > { %s33_s23 = ssub.s32 %s928_s16, %s1132_s20  ;;  %p127_p8 = scmp.eq.s32.totalorder %s720_s19, 1 }
   0xb   : > { %p35_p7 = scmp.eq.s32.totalorder %s33_s23, 0  ;;  %p723_p10 = scmp.ge.s32.totalorder %s932_s17, 2 }
   0xc   : > { %p1008_p9 = por %p127_p8, %p126_p6 }
   0xd   : > { %s1006_s24 = scalar_select %p35_p7, %s920_s14, %s37_s21  }
   0xe   : > { %156 = sbr.rel (%p723_p10) target bundleno = 28 (0x1c), region = 24 }
  0x15   : > { %159 = sbr.rel (!%p46_p4) target bundleno = 28 (0x1c), region = 28  ;;  %s161_s26 = sand.u32 (%p46_p4), 1, %s920_s14  }
  0x16   : > { %s725_s27 = sshll.u32 (%p46_p4), %s928_s16, 3  ;;  %s724_s28 = sshll.u32 (%p46_p4), %s161_s26, 4 }
  0x17   : > { %s168_s4 = scalar_lea.vmem (%p46_p4), %s1120_s0, %s725_s27  ;;  %s163_s5 = scalar_lea.vmem (%p46_p4), [#allocation2], %s724_s28 }
  0x18   : > { %v198_v0 = vld [vmem:[%s168_s4] sm:$0xff] (%p46_p4)  ;;  %v200_v1 = vld [vmem:[%s168_s4 + $0x10] sm:$0xff] (%p46_p4) }
  0x19   : > { %199 = vst [vmem:[%s163_s5] sm:$0xff] (%p46_p4), %v198_v0  ;;  %201 = vst [vmem:[%s163_s5 + $0x8] sm:$0xff] (%p46_p4), %v200_v1 }
  0x1c PF: > { %p726_p11 = scmp.ge.s32.totalorder %s932_s17, 1  ;;  %p206_p12 = scmp.lt.s32.totalorder %s932_s17, 3 }
  0x1e   : > { %p207_p13 = pnand %p726_p11, %p206_p12 }
  0x1f   : > { %v256_v2 = vld [vmem:[%s1122_s2] sm:$0xf] (!%p207_p13)  ;;  %vm264_vm0 = vcmask (!%p207_p13), 1043456   ;;  %s1026_s8 = sand.u32 (!%p207_p13), 1, %s916_s13   ;;  %v934_v3 = vmov (!%p207_p13), 0.0   ;;  %vm935_vm1 = vmmov (!%p207_p13), 0  }
  0x20   : > { %210 = sbr.rel (%p207_p13) target bundleno = 808 (0x328), region = 66  ;;  %756 = vmatprep.subr.mxu1 (!%p207_p13), %v934_v3  ;;  %758 = vmatprep.mubr.msk.f32.mxu1 (!%p207_p13), %vm935_vm1, %v934_v3  ;;  %s727_s9 = sshll.u32 (!%p207_p13), %s1026_s8, 4  ;;  %vm260_vm2 = vcmask (!%p207_p13), 31744   ;;  %v258_v4 = vld [vmem:[%s1121_s1] sm:$0xff] (!%p207_p13)  ;;  %v259_v5 = vld [vmem:[%s1121_s1 + $0x8] sm:$0xff] (!%p207_p13)  ;;  %v735_v6 = vld [vmem:[%s1121_s1 + $0x10] sm:$0xff] (!%p207_p13) }
  0x21   : > { %757 = vmatpush3.msk.msra.mxu1 (!%p207_p13), %vm264_vm0, %v256_v2  ;;  %768 = vmatprep.subr.mxu0 (!%p207_p13), %v934_v3  ;;  %s215_s26 = scalar_lea.vmem (!%p207_p13), [#allocation2], %s727_s9  ;;  %v736_v9 = vld [vmem:[%s1121_s1 + $0x18] sm:$0xff] (!%p207_p13)  ;;  %v936_v10 = vmov (!%p207_p13), 0.0|0.0   ;;  %v781_v11 = vpack.c.bf16 (!%p207_p13), %v259_v5, %v258_v4  ;;  %vm782_vm3 = vmpackc.low (!%p207_p13), %vm260_vm2, %vm260_vm2  ;;  %s728_s29 = sshll.u32 (!%p207_p13), %s1026_s8, 3  ;;  %vm254_vm4 = vcmask (!%p207_p13), 130048  }
  0x22   : > { %v257_v7 = vld [vmem:[%s215_s26] sm:$0xff] (!%p207_p13)  ;;  %769 = vmatpush3.msk.msra.mxu0 (!%p207_p13), %vm264_vm0, %v256_v2  ;;  %770 = vmatprep.mubr.msk.f32.mxu0 (!%p207_p13), %vm935_vm1, %v934_v3  ;;  %v734_v8 = vld [vmem:[%s215_s26 + $0x8] sm:$0xff] (!%p207_p13)  ;;  %v785_v12 = vpack.c.bf16 (!%p207_p13), %v736_v9, %v735_v6  ;;  %s1052_s30 = scalar_lea.vmem (!%p207_p13), [#allocation3], %s728_s29  ;;  %s743_s4 = sshll.u32 (!%p207_p13), %s924_s15, 7 }
  0x23   : > { %759 = vmatmul.mubr.msk.f32.vlgmr.msra.gmra.mrb[0].mxu1 (!%p207_p13), %vm260_vm2, %v257_v7  ;;  %771 = vmatmul.mubr.msk.f32.vlgmr.msra.gmra.mrb[0].mxu0 (!%p207_p13), %vm260_vm2, %v734_v8  ;;  %255 = vst.msk [vmem:[%s1052_s30] sm:$0xff] (!%p207_p13), %vm254_vm4, %v934_v3  ;;  %s629_s5 = sshll.u32 (!%p207_p13), %s1052_s30, 4  ;;  %s1069_s9 = scalar_lea.hbm (!%p207_p13), %s1123_s3, %s743_s4  ;;  %s1071_s5 = int_to_ptr.vmem [resolvable:$true] %s629_s5 }
  0x24   : > { %780 = vmatprep.subr.bf16.mxu1 (!%p207_p13), %v936_v10  ;;  %784 = vmatprep.subr.bf16.mxu0 (!%p207_p13), %v936_v10  ;;  %s616_s10 = scalar_lea.sflag (!%p207_p13), [#allocation4], %s1026_s8  ;;  %s854_s11 = scalar_lea.vmem (!%p207_p13), %s1071_s5, 128 }
  0x25   : > { %765 = vmatprep.mubr.msk.f32.mxu1 (!%p207_p13), %vm935_vm1, %v934_v3  ;;  %777 = vmatprep.mubr.msk.f32.mxu0 (!%p207_p13), %vm935_vm1, %v934_v3  ;;  %p855_p0 = scmp.ne.s32.totalorder (!%p207_p13), %s1071_s5, %s854_s11  ;;  %s937_s15 = smov (!%p207_p13), [#allocation3]  }
  0x26   : > { %s858_s18 = sshll.u32 (!%p207_p13), %s937_s15, 4  ;;  %s859_s18 = int_to_ptr.vmem [resolvable:$false] %s858_s18 }
  0x27   : > { %p856_p1 = pnand %p855_p0, %p997_p5  ;;  %s860_s19 = scalar_lea.vmem %s859_s18, 256 }
  0x28   : > { %783 = vmatpush3.bf16.xpose.msk.msra.mxu1 %vm782_vm3, %v781_v11  ;;  %p861_p3 = scmp.lt.s32.totalorder %s1071_s5, %s859_s18  ;;  %p862_p4 = scmp.lt.s32.totalorder %s860_s19, %s854_s11 }
  0x29   : > { %787 = vmatpush3.bf16.xpose.msk.msra.mxu0 %vm782_vm3, %v785_v12  ;;  %p857_p2 = pneg %p856_p1 }
  0x2a   : > { %v434_v45 = vld [vmem:[%s1052_s30] sm:$0xff]  ;;  %p863_p6 = por %p862_p4, %p861_p3 }
  0x2c   : > { %p864_p7 = pnand %p863_p6, %p857_p2 }
  0xf6   : > { %v334_v13 = vpop.f32.mrb[0].mxu1  ;;  %v512_v14 = vpop.f32.mrb[0].mxu0 }
  0xf7   : > { %v760_v15 = vpop.f32.mrb[1].mxu1  ;;  %766 = vmatmul.mubr.msk.f32.vlgmr.msra.gmra.mrb[2].mxu1 %vm260_vm2, %v334_v13  ;;  %778 = vmatmul.mubr.msk.f32.vlgmr.msra.gmra.mrb[2].mxu0 %vm260_vm2, %v512_v14  ;;  %v772_v16 = vpop.f32.mrb[1].mxu0 }
 0x1ca   : > { %v413_v17 = vpop.f32.mrb[2].mxu1  ;;  %v591_v18 = vpop.f32.mrb[2].mxu0 }
 0x1cb   : > { %v418_v19 = vmul.f32 0.2, %v413_v17  ;;  %v767_v20 = vpop.f32.mrb[3].mxu1  ;;  %vm595_vm5 = vcmp.gt.f32.partialorder %v591_v18, 0.0  ;;  %v596_v21 = vmul.f32 0.2, %v591_v18 }
 0x1cc   : > { %vm417_vm6 = vcmp.gt.f32.partialorder %v413_v17, 0.0  ;;  %v779_v22 = vpop.f32.mrb[3].mxu0 }
 0x1cd   : > { %v419_v23 = vsel %vm417_vm6, %v413_v17, %v418_v19  ;;  %v597_v24 = vsel %vm595_vm5, %v591_v18, %v596_v21 }
 0x1ce   : > { %v421_v25 = vsel %vm254_vm4, %v419_v23, -inf  ;;  %v598_v26 = vsel %vm254_vm4, %v597_v24, -inf }
 0x1cf   : > { %422 = vmax.xlane.f32.xlu0 %v421_v25 }
 0x1d3   : > { %599 = vmax.xlane.f32.xlu0 %v598_v26 }
 0x25c   : > { %v423_v27 = vpop.xlane.xlu0 %422 }
 0x25d   : > { %v424_v28 = vsub.f32 %v419_v23, %v423_v27 }
 0x25f   : > { %v425_v29 = vmul.f32 1.442695, %v424_v28 }
 0x260   : > { %v600_v30 = vpop.xlane.xlu0 %599 }
 0x261   : > { %846 = vpow2.f32 %v425_v29  ;;  %v601_v31 = vsub.f32 %v597_v24, %v600_v30 }
 0x263   : > { %v602_v32 = vmul.f32 1.442695, %v601_v31 }
 0x265   : > { %848 = vpow2.f32 %v602_v32 }
 0x26b   : > { %v847_v33 = vpop.eup %846 }
 0x26c   : > { %v427_v34 = vsel %vm254_vm4, %v847_v33, 0.0 }
 0x26d   : > { %428 = vadd.xlane.f32.xlu1 %v427_v34 }
 0x26f   : > { %v849_v35 = vpop.eup %848 }
 0x270   : > { %v604_v36 = vsel %vm254_vm4, %v849_v35, 0.0 }
 0x271   : > { %605 = vadd.xlane.f32.xlu1 %v604_v36 }
 0x2fa   : > { %v429_v37 = vpop.xlane.xlu1 %428 }
 0x2fb   : > { %850 = vrcp.f32 %v429_v37 }
 0x2fe   : > { %v606_v38 = vpop.xlane.xlu1 %605 }
 0x2ff   : > { %852 = vrcp.f32 %v606_v38 }
 0x305   : > { %v851_v39 = vpop.eup %850 }
 0x306   : > { %v431_v40 = vmul.f32 %v851_v39, %v429_v37 }
 0x308   : > { %v432_v41 = vsub.f32 2.0, %v431_v40 }
 0x309   : > { %v853_v42 = vpop.eup %852 }
 0x30a   : > { %v433_v43 = vmul.f32 %v851_v39, %v432_v41  ;;  %v608_v44 = vmul.f32 %v853_v42, %v606_v38 }
 0x30c   : > { %v435_v46 = vmul.f32 %v847_v33, %v433_v43  ;;  %v609_v48 = vsub.f32 2.0, %v608_v44 }
 0x30e   : > { %v436_v47 = vadd.f32 %v435_v46, %v434_v45  ;;  %v610_v49 = vmul.f32 %v853_v42, %v609_v48 }
 0x310   : > { %437 = vst.msk [vmem:[%s1052_s30] sm:$0xff] %vm254_vm4, %v436_v47  ;;  %v612_v50 = vmul.f32 %v849_v35, %v610_v49 }
 0x317   : > { %v611_v51 = vld [vmem:[%s1052_s30] sm:$0xff] }
 0x318   : > { %v613_v52 = vadd.f32 %v612_v50, %v611_v51 }
 0x31a   : > { %614 = vst.msk [vmem:[%s1052_s30] sm:$0xff] %vm254_vm4, %v613_v52 }
 0x31b   : > { %867 = shalt.err (!%p864_p7)
}
 0x31c   : > { %s868_s8 = scalar_lea.hbm %s1069_s9, 128  ;;  %s872_s26 = scalar_lea.hbm %s1123_s3, 256 }
 0x31d   : > { %p869_p8 = scmp.ne.s32.totalorder %s1069_s9, %s868_s8  ;;  %p873_p13 = scmp.lt.u32.totalorder %s1069_s9, %s1123_s3 }
 0x31e   : > { %p874_p0 = scmp.lt.u32.totalorder %s872_s26, %s868_s8  ;;  %p876_p2 = scmp.lt.u32.totalorder %s868_s8, %s1069_s9 }
 0x31f   : > { %p870_p11 = pnand %p869_p8, %p997_p5 }
 0x320   : > { %p875_p1 = por %p874_p0, %p873_p13 }
 0x321   : > { %p871_p12 = pneg %p870_p11 }
 0x322   : > { %p877_p3 = por %p876_p2, %p875_p1 }
 0x324   : > { %p878_p4 = pnand %p877_p3, %p871_p12 }
 0x326   : > { %881 = shalt.err (!%p878_p4)
}
 0x327   : > { %788 = dma.vmem_to_hbm [thread:$0]  (%p997_p5), %s1071_s5, 128, %s1069_s9, %s616_s10  }
 0x328 PF: > { %s641_s29 = sand.u32 1, %s912_s12   ;;  %p791_p6 = pnand %p723_p10, %p1008_p9 }
 0x329   : > { %s642_s30 = scalar_lea.sflag [#allocation4], %s641_s29 }
 0x32a   : > { %907 = dma.done.wait (!%p791_p6), %s642_s30, 128  }
 0x32b   : > { %909 = vsyncadd (!%p791_p6), %s642_s30, 4294967168  ;;  %s16_s17 = sadd.s32 1, %s932_s17   ;;  %s1126_s12 = smov %s916_s13 }
 0x32c   : > { %p13_p7 = scmp.ge.s32.totalorder %s16_s17, 4   ;;  %s1127_s13 = smov %s920_s14 }
 0x32d   : > { %s1128_s14 = smov %s1006_s24  ;;  %s1129_s15 = smov %s928_s16 }
 0x32e   : > { %s1130_s16 = smov %s1132_s20  ;;  %15 = sbr.rel (!%p13_p7) target bundleno = 4 (0x4), region = 119 }
 0x335   :  { %647 = vsyncpa [#allocation4], 1 }
 0x336   :  { %649 = vsyncpa [#allocation4 + $0x1], 1 }

</bundles_post_ra>
